<compile_context>
chip_gen: v5e
topology: v5e:2x2
jax: 0.10.0
libtpu: 0.0.40
codegen_flags: <defaults>
</compile_context>

<pallas_src>
import functools

import jax
import jax.numpy as jnp
from jax.experimental import pallas as pl
from jax.experimental.pallas import tpu as pltpu

LANES = 128
MAX_TILE_ROWS = 8192          # 4 MiB per f32 input block
NSUM_ROWS = 8                 # one f32 vreg of per-lane partial sums per core
FOCAL_ALPHA = 0.25            # FocalLoss(alpha=0.25, gamma=2)
DICE_SMOOTH = 1.0
TV_ALPHA, TV_BETA, TV_SMOOTH = 0.3, 0.7, 1.0


def _cdiv(a, b):
    return -(-a // b)


def _combo_sums_kernel(x_ref, t_ref, out_ref, *, steps_per_core, num_valid_blocks,
                       gate_blocks, need_bce, need_focal, need_overlap,
                       assume_binary_targets):
    """Accumulate per-lane partial sums into an (NSUM_ROWS, 128) f32 block.

    Output rows: 0: sum(bce)  1: sum((1-pt)^2 * bce)  2: sum(x*t)  3: sum(x)
    4: sum(t); rows 5..7 stay zero.  Focal alpha, the means and the dice /
    tversky ratios are applied outside the kernel in plain JAX.
    """
    s = pl.program_id(1)

    @pl.when(s == 0)
    def _init():
        out_ref[...] = jnp.zeros_like(out_ref)

    def _accumulate():
        x = x_ref[...].astype(jnp.float32)
        t = t_ref[...].astype(jnp.float32)

        if need_bce or need_focal:
            # PyTorch binary_cross_entropy clamps the log terms at -100.
            log_x = jnp.maximum(jnp.log(x), -100.0)
            log_1mx = jnp.maximum(jnp.log(1.0 - x), -100.0)
            if assume_binary_targets:
                t_pos = t > 0.5
                ll = jnp.where(t_pos, log_x, log_1mx)          # = -bce
            else:
                ll = t * log_x + (1.0 - t) * log_1mx           # = -bce
            bce = -ll
            if need_bce:
                out_ref[0:1, :] += jnp.sum(bce, axis=0, keepdims=True)
            if need_focal:
                if assume_binary_targets:
                    pt = jnp.where(t_pos, x, 1.0 - x)          # exp removed
                else:
                    pt = jnp.exp(ll)
                # gamma == 2 -> square; alpha applied in the JAX finalize.
                focal = jnp.square(1.0 - pt) * bce
                out_ref[1:2, :] += jnp.sum(focal, axis=0, keepdims=True)

        if need_overlap:
            out_ref[2:3, :] += jnp.sum(x * t, axis=0, keepdims=True)
            out_ref[3:4, :] += jnp.sum(x, axis=0, keepdims=True)
            out_ref[4:5, :] += jnp.sum(t, axis=0, keepdims=True)

    if gate_blocks:
        # Odd block count split over 2 cores: the last step of the last core is
        # a (clamped) duplicate block -> skip its contribution entirely.
        c = pl.program_id(0)

        @pl.when(c * steps_per_core + s < num_valid_blocks)
        def _():
            _accumulate()
    else:
        _accumulate()


def _partial_sums(x2, t2, *, tile_rows, num_splits, steps_per_core,
                  num_valid_blocks, need_bce, need_focal, need_overlap,
                  assume_binary_targets):
    """One pallas_call over `num_valid_blocks` full (tile_rows, 128) blocks."""
    gate_blocks = (num_splits * steps_per_core) != num_valid_blocks

    kernel = functools.partial(
        _combo_sums_kernel,
        steps_per_core=steps_per_core, num_valid_blocks=num_valid_blocks,
        gate_blocks=gate_blocks, need_bce=need_bce, need_focal=need_focal,
        need_overlap=need_overlap, assume_binary_targets=assume_binary_targets)

    if gate_blocks:
        last = num_valid_blocks - 1

        def in_map(c, s):
            # Clamp so the duplicate step never issues an out-of-bounds fetch;
            # its data is ignored by the in-kernel gate.
            return (jnp.minimum(c * steps_per_core + s, last), 0)
    else:
        def in_map(c, s):
            return (c * steps_per_core + s, 0)

    parts = pl.pallas_call(
        kernel,
        out_shape=jax.ShapeDtypeStruct((num_splits, NSUM_ROWS, LANES), jnp.float32),
        grid_spec=pltpu.PrefetchScalarGridSpec(
            num_scalar_prefetch=0,
            grid=(num_splits, steps_per_core),
            in_specs=[pl.BlockSpec((tile_rows, LANES), in_map),
                      pl.BlockSpec((tile_rows, LANES), in_map)],
            out_specs=pl.BlockSpec((None, NSUM_ROWS, LANES), lambda c, s: (c, 0, 0)),
        ),
        compiler_params=pltpu.CompilerParams(
            dimension_semantics=("parallel", "arbitrary"),
            vmem_limit_bytes=32 * 1024 * 1024),
    )(x2, t2)
    return jnp.sum(parts, axis=(0, 2))            # (NSUM_ROWS,) f32


def combo_loss(inputs, targets, weights=None, *, assume_binary_targets=False,
               max_tile_rows=MAX_TILE_ROWS):
    """ComboLoss forward: w_bce*BCE + w_focal*Focal + w_dice*(1-Dice) + w_tversky*(1-Tversky).

    inputs/targets: any matching shape, probabilities in (0, 1).  bf16 inputs
    are supported (and recommended on v5e/v6e): the kernel casts to f32 after
    load, halving HBM traffic.
    """
    weights = weights or {'bce': 1.0, 'focal': 1.0, 'dice': 1.0, 'tversky': 1.0}
    w_bce = float(weights.get('bce', 0.0))
    w_focal = float(weights.get('focal', 0.0))
    w_dice = float(weights.get('dice', 0.0))
    w_tversky = float(weights.get('tversky', 0.0))

    need_bce = w_bce > 0
    need_focal = w_focal > 0
    need_overlap = (w_dice > 0) or (w_tversky > 0)
    if not (need_bce or need_focal or need_overlap):
        return jnp.float32(0.0)

    x = inputs.reshape(-1)
    t = targets.reshape(-1)
    total = x.shape[0]
    if total == 0:
        return jnp.float32(0.0)

    rows = _cdiv(total, LANES)
    pad = rows * LANES - total
    if pad:
        # Pad at most 127 elements with x = 1, t = 1: bce/focal contribute 0 and
        # the +pad to tp/sum(x)/sum(t) is subtracted in the finalize below.
        # TODO(synk): a manual-DMA tail would avoid this (whole-array) copy for
        # the rare non-lane-aligned case.
        x = jnp.concatenate([x, jnp.ones((pad,), x.dtype)])
        t = jnp.concatenate([t, jnp.ones((pad,), t.dtype)])
    x2 = x.reshape(rows, LANES)
    t2 = t.reshape(rows, LANES)

    sum_kwargs = dict(need_bce=need_bce, need_focal=need_focal,
                      need_overlap=need_overlap,
                      assume_binary_targets=assume_binary_targets)

    if rows <= max_tile_rows:
        # Single full-array block (block dims equal to array dims).
        sums = _partial_sums(x2, t2, tile_rows=rows, num_splits=1,
                             steps_per_core=1, num_valid_blocks=1, **sum_kwargs)
    else:
        tile_rows = max(8, (max_tile_rows // 8) * 8)
        nb_full = rows // tile_rows
        rem_rows = rows - nb_full * tile_rows
        num_splits = 2 if nb_full >= 2 else 1      # megacore split (v7x)
        spc = _cdiv(nb_full, num_splits)
        sums = _partial_sums(x2, t2, tile_rows=tile_rows, num_splits=num_splits,
                             steps_per_core=spc, num_valid_blocks=nb_full,
                             **sum_kwargs)
        if rem_rows:
            # Tiny separate remainder call -> no block ever reads out of bounds.
            sums = sums + _partial_sums(
                x2[nb_full * tile_rows:], t2[nb_full * tile_rows:],
                tile_rows=rem_rows, num_splits=1, steps_per_core=1,
                num_valid_blocks=1, **sum_kwargs)

    # --- finalize (cheap scalar math) in plain JAX ---
    n = jnp.float32(total)
    loss = jnp.float32(0.0)
    if need_bce:
        loss = loss + w_bce * (sums[0] / n)
    if need_focal:
        loss = loss + w_focal * (FOCAL_ALPHA * sums[1] / n)
    if need_overlap:
        padf = jnp.float32(pad)
        tp = sums[2] - padf
        s_in = sums[3] - padf
        s_tgt = sums[4] - padf
        if w_dice > 0:
            dice = (2.0 * tp + DICE_SMOOTH) / (s_in + s_tgt + DICE_SMOOTH)
            loss = loss + w_dice * (1.0 - dice)
        if w_tversky > 0:
            fp = s_in - tp                 # sum((1 - t) * x)
            fn = s_tgt - tp                # sum(t * (1 - x))
            tversky = (tp + TV_SMOOTH) / (tp + TV_ALPHA * fp + TV_BETA * fn + TV_SMOOTH)
            loss = loss + w_tversky * (1.0 - tversky)
    return loss


def _reference_combo_loss(inputs, targets, weights=None):
    weights = weights or {'bce': 1.0, 'focal': 1.0, 'dice': 1.0, 'tversky': 1.0}
    w_bce = float(weights.get('bce', 0.0))
    w_focal = float(weights.get('focal', 0.0))
    w_dice = float(weights.get('dice', 0.0))
    w_tversky = float(weights.get('tversky', 0.0))
    x = inputs.reshape(-1).astype(jnp.float32)
    t = targets.reshape(-1).astype(jnp.float32)
    bce = -(t * jnp.maximum(jnp.log(x), -100.0)
            + (1.0 - t) * jnp.maximum(jnp.log(1.0 - x), -100.0))
    pt = jnp.exp(-bce)
    focal = FOCAL_ALPHA * (1.0 - pt) ** 2 * bce
    tp = jnp.sum(x * t)
    s_in, s_t = jnp.sum(x), jnp.sum(t)
    dice = (2.0 * tp + DICE_SMOOTH) / (s_in + s_t + DICE_SMOOTH)
    fp, fn = s_in - tp, s_t - tp
    tversky = (tp + TV_SMOOTH) / (tp + TV_ALPHA * fp + TV_BETA * fn + TV_SMOOTH)
    loss = jnp.float32(0.0)
    if w_bce > 0:
        loss = loss + w_bce * jnp.mean(bce)
    if w_focal > 0:
        loss = loss + w_focal * jnp.mean(focal)
    if w_dice > 0:
        loss = loss + w_dice * (1.0 - dice)
    if w_tversky > 0:
        loss = loss + w_tversky * (1.0 - tversky)
    return loss


if __name__ == "__main__":
    key = jax.random.PRNGKey(0)
    k1, k2, k3, k4 = jax.random.split(key, 4)

    # 1) Module-shaped small case: (B, C, H, W) = (2, 4, 16, 16)
    shape = (2, 4, 16, 16)
    inputs = jax.nn.sigmoid(jax.random.normal(k1, shape, jnp.float32))
    targets = jax.random.bernoulli(k2, 0.5, shape).astype(jnp.float32)
    loss = jax.block_until_ready(combo_loss(inputs, targets))
    ref = _reference_combo_loss(inputs, targets)
    assert jnp.allclose(loss, ref, rtol=1e-5, atol=1e-5), (loss, ref)

    # 2) Ragged size, multi-block, 2-way core split with a gated duplicate block
    #    and a remainder call (tile forced tiny to exercise the tiling logic).
    n = 5333
    xi = jax.nn.sigmoid(jax.random.normal(k3, (n,), jnp.float32))
    ti = jax.random.bernoulli(k4, 0.3, (n,)).astype(jnp.float32)
    loss2 = jax.block_until_ready(combo_loss(xi, ti, max_tile_rows=8))
    ref2 = _reference_combo_loss(xi, ti)
    assert jnp.allclose(loss2, ref2, rtol=1e-5, atol=1e-5), (loss2, ref2)

    # 3) bf16 inputs (recommended caller contract on v5e/v6e) + partial weights.
    w = {'bce': 0.5, 'dice': 2.0}            # missing keys default to 0
    xb = inputs.astype(jnp.bfloat16)
    tb = targets.astype(jnp.bfloat16)
    loss3 = jax.block_until_ready(combo_loss(xb, tb, weights=w))
    ref3 = _reference_combo_loss(xb, tb, weights=w)
    assert jnp.allclose(loss3, ref3, rtol=1e-5, atol=1e-5), (loss3, ref3)

    print("KERNEL_OK")
</pallas_src>

<mosaic_0001>
module attributes {stable_mosaic.version = 11 : i64} {
  func.func @_combo_sums_kernel(%arg0: i32, %arg1: i32, %arg2: memref<16x128xf32, #tpu.memory_space<vmem>>, %arg3: memref<16x128xf32, #tpu.memory_space<vmem>>, %arg4: memref<1x8x128xf32, #tpu.memory_space<vmem>>) attributes {dimension_semantics = [#tpu.dimension_semantics<parallel>, #tpu.dimension_semantics<arbitrary>], iteration_bounds = array<i64: 1, 1>, scalar_prefetch = 0 : i64, scratch_operands = 0 : i64, tpu.core_type = #tpu.core_type<tc>, window_params = [{transform_indices = @transform_0, window_bounds = array<i64: 16, 128>}, {transform_indices = @transform_1, window_bounds = array<i64: 16, 128>}, {transform_indices = @transform_2, window_bounds = array<i64: 1, 8, 128>}]} {
    %c0_i32 = arith.constant 0 : i32
    %0 = arith.cmpi eq, %arg1, %c0_i32 : i32
    %1 = arith.extui %0 : i1 to i32
    %c0_i32_0 = arith.constant 0 : i32
    %2 = arith.cmpi ne, %1, %c0_i32_0 : i32
    scf.if %2 {
      %cst_40 = arith.constant 0.000000e+00 : f32
      %66 = vector.broadcast %cst_40 : f32 to vector<8x128xf32>
      %c0_41 = arith.constant 0 : index
      %c0_42 = arith.constant 0 : index
      %c0_43 = arith.constant 0 : index
      %67 = vector.load %arg4[%c0_41, %c0_42, %c0_43] : memref<1x8x128xf32, #tpu.memory_space<vmem>>, vector<1x8x128xf32>
      %68 = vector.shape_cast %67 : vector<1x8x128xf32> to vector<8x128xf32>
      %69 = vector.shape_cast %66 : vector<8x128xf32> to vector<1x8x128xf32>
      tpu.vector_store %arg4[%c0_41, %c0_42, %c0_43], %69 {strides = array<i32>} : memref<1x8x128xf32, #tpu.memory_space<vmem>>, vector<1x8x128xf32>,
    } else {
    }
    %c0 = arith.constant 0 : index
    %c0_1 = arith.constant 0 : index
    %3 = vector.load %arg2[%c0, %c0_1] : memref<16x128xf32, #tpu.memory_space<vmem>>, vector<16x128xf32>
    %c0_2 = arith.constant 0 : index
    %c0_3 = arith.constant 0 : index
    %4 = vector.load %arg3[%c0_2, %c0_3] : memref<16x128xf32, #tpu.memory_space<vmem>>, vector<16x128xf32>
    %5 = math.log %3 : vector<16x128xf32>
    %cst = arith.constant -1.000000e+02 : f32
    %6 = vector.broadcast %cst : f32 to vector<16x128xf32>
    %7 = arith.maximumf %5, %6 : vector<16x128xf32>
    %cst_4 = arith.constant 1.000000e+00 : f32
    %8 = vector.broadcast %cst_4 : f32 to vector<16x128xf32>
    %9 = arith.subf %8, %3 : vector<16x128xf32>
    %10 = math.log %9 : vector<16x128xf32>
    %cst_5 = arith.constant -1.000000e+02 : f32
    %11 = vector.broadcast %cst_5 : f32 to vector<16x128xf32>
    %12 = arith.maximumf %10, %11 : vector<16x128xf32>
    %13 = arith.mulf %4, %7 : vector<16x128xf32>
    %cst_6 = arith.constant 1.000000e+00 : f32
    %14 = vector.broadcast %cst_6 : f32 to vector<16x128xf32>
    %15 = arith.subf %14, %4 : vector<16x128xf32>
    %16 = arith.mulf %15, %12 : vector<16x128xf32>
    %17 = arith.addf %13, %16 : vector<16x128xf32>
    %cst_7 = arith.constant 0.000000e+00 : f32
    %18 = vector.broadcast %cst_7 : f32 to vector<16x128xf32>
    %19 = arith.subf %18, %17 : vector<16x128xf32>
    %c0_8 = arith.constant 0 : index
    %c0_9 = arith.constant 0 : index
    %c0_10 = arith.constant 0 : index
    %20 = vector.load %arg4[%c0_8, %c0_9, %c0_10] : memref<1x8x128xf32, #tpu.memory_space<vmem>>, vector<1x1x128xf32>
    %21 = vector.shape_cast %20 : vector<1x1x128xf32> to vector<1x128xf32>
    %cst_11 = arith.constant dense<0.000000e+00> : vector<128xf32>
    %22 = vector.multi_reduction <add>, %19, %cst_11 [0] : vector<16x128xf32> to vector<128xf32>
    %23 = vector.shape_cast %22 : vector<128xf32> to vector<1x128xf32>
    %24 = arith.addf %21, %23 : vector<1x128xf32>
    %c0_12 = arith.constant 0 : index
    %c0_13 = arith.constant 0 : index
    %c0_14 = arith.constant 0 : index
    %25 = vector.load %arg4[%c0_12, %c0_13, %c0_14] : memref<1x8x128xf32, #tpu.memory_space<vmem>>, vector<1x1x128xf32>
    %26 = vector.shape_cast %25 : vector<1x1x128xf32> to vector<1x128xf32>
    %27 = vector.shape_cast %24 : vector<1x128xf32> to vector<1x1x128xf32>
    tpu.vector_store %arg4[%c0_12, %c0_13, %c0_14], %27 {strides = array<i32>} : memref<1x8x128xf32, #tpu.memory_space<vmem>>, vector<1x1x128xf32>,
    %28 = math.exp %17 : vector<16x128xf32>
    %cst_15 = arith.constant 1.000000e+00 : f32
    %29 = vector.broadcast %cst_15 : f32 to vector<16x128xf32>
    %30 = arith.subf %29, %28 : vector<16x128xf32>
    %31 = arith.mulf %30, %30 : vector<16x128xf32>
    %32 = arith.mulf %31, %19 : vector<16x128xf32>
    %c0_16 = arith.constant 0 : index
    %c1 = arith.constant 1 : index
    %c0_17 = arith.constant 0 : index
    %33 = vector.load %arg4[%c0_16, %c1, %c0_17] : memref<1x8x128xf32, #tpu.memory_space<vmem>>, vector<1x1x128xf32>
    %34 = vector.shape_cast %33 : vector<1x1x128xf32> to vector<1x128xf32>
    %cst_18 = arith.constant dense<0.000000e+00> : vector<128xf32>
    %35 = vector.multi_reduction <add>, %32, %cst_18 [0] : vector<16x128xf32> to vector<128xf32>
    %36 = vector.shape_cast %35 : vector<128xf32> to vector<1x128xf32>
    %37 = arith.addf %34, %36 : vector<1x128xf32>
    %c0_19 = arith.constant 0 : index
    %c1_20 = arith.constant 1 : index
    %c0_21 = arith.constant 0 : index
    %38 = vector.load %arg4[%c0_19, %c1_20, %c0_21] : memref<1x8x128xf32, #tpu.memory_space<vmem>>, vector<1x1x128xf32>
    %39 = vector.shape_cast %38 : vector<1x1x128xf32> to vector<1x128xf32>
    %40 = vector.shape_cast %37 : vector<1x128xf32> to vector<1x1x128xf32>
    tpu.vector_store %arg4[%c0_19, %c1_20, %c0_21], %40 {strides = array<i32>} : memref<1x8x128xf32, #tpu.memory_space<vmem>>, vector<1x1x128xf32>,
    %c0_22 = arith.constant 0 : index
    %c2 = arith.constant 2 : index
    %c0_23 = arith.constant 0 : index
    %41 = vector.load %arg4[%c0_22, %c2, %c0_23] : memref<1x8x128xf32, #tpu.memory_space<vmem>>, vector<1x1x128xf32>
    %42 = vector.shape_cast %41 : vector<1x1x128xf32> to vector<1x128xf32>
    %43 = arith.mulf %3, %4 : vector<16x128xf32>
    %cst_24 = arith.constant dense<0.000000e+00> : vector<128xf32>
    %44 = vector.multi_reduction <add>, %43, %cst_24 [0] : vector<16x128xf32> to vector<128xf32>
    %45 = vector.shape_cast %44 : vector<128xf32> to vector<1x128xf32>
    %46 = arith.addf %42, %45 : vector<1x128xf32>
    %c0_25 = arith.constant 0 : index
    %c2_26 = arith.constant 2 : index
    %c0_27 = arith.constant 0 : index
    %47 = vector.load %arg4[%c0_25, %c2_26, %c0_27] : memref<1x8x128xf32, #tpu.memory_space<vmem>>, vector<1x1x128xf32>
    %48 = vector.shape_cast %47 : vector<1x1x128xf32> to vector<1x128xf32>
    %49 = vector.shape_cast %46 : vector<1x128xf32> to vector<1x1x128xf32>
    tpu.vector_store %arg4[%c0_25, %c2_26, %c0_27], %49 {strides = array<i32>} : memref<1x8x128xf32, #tpu.memory_space<vmem>>, vector<1x1x128xf32>,
    %c0_28 = arith.constant 0 : index
    %c3 = arith.constant 3 : index
    %c0_29 = arith.constant 0 : index
    %50 = vector.load %arg4[%c0_28, %c3, %c0_29] : memref<1x8x128xf32, #tpu.memory_space<vmem>>, vector<1x1x128xf32>
    %51 = vector.shape_cast %50 : vector<1x1x128xf32> to vector<1x128xf32>
    %cst_30 = arith.constant dense<0.000000e+00> : vector<128xf32>
    %52 = vector.multi_reduction <add>, %3, %cst_30 [0] : vector<16x128xf32> to vector<128xf32>
    %53 = vector.shape_cast %52 : vector<128xf32> to vector<1x128xf32>
    %54 = arith.addf %51, %53 : vector<1x128xf32>
    %c0_31 = arith.constant 0 : index
    %c3_32 = arith.constant 3 : index
    %c0_33 = arith.constant 0 : index
    %55 = vector.load %arg4[%c0_31, %c3_32, %c0_33] : memref<1x8x128xf32, #tpu.memory_space<vmem>>, vector<1x1x128xf32>
    %56 = vector.shape_cast %55 : vector<1x1x128xf32> to vector<1x128xf32>
    %57 = vector.shape_cast %54 : vector<1x128xf32> to vector<1x1x128xf32>
    tpu.vector_store %arg4[%c0_31, %c3_32, %c0_33], %57 {strides = array<i32>} : memref<1x8x128xf32, #tpu.memory_space<vmem>>, vector<1x1x128xf32>,
    %c0_34 = arith.constant 0 : index
    %c4 = arith.constant 4 : index
    %c0_35 = arith.constant 0 : index
    %58 = vector.load %arg4[%c0_34, %c4, %c0_35] : memref<1x8x128xf32, #tpu.memory_space<vmem>>, vector<1x1x128xf32>
    %59 = vector.shape_cast %58 : vector<1x1x128xf32> to vector<1x128xf32>
    %cst_36 = arith.constant dense<0.000000e+00> : vector<128xf32>
    %60 = vector.multi_reduction <add>, %4, %cst_36 [0] : vector<16x128xf32> to vector<128xf32>
    %61 = vector.shape_cast %60 : vector<128xf32> to vector<1x128xf32>
    %62 = arith.addf %59, %61 : vector<1x128xf32>
    %c0_37 = arith.constant 0 : index
    %c4_38 = arith.constant 4 : index
    %c0_39 = arith.constant 0 : index
    %63 = vector.load %arg4[%c0_37, %c4_38, %c0_39] : memref<1x8x128xf32, #tpu.memory_space<vmem>>, vector<1x1x128xf32>
    %64 = vector.shape_cast %63 : vector<1x1x128xf32> to vector<1x128xf32>
    %65 = vector.shape_cast %62 : vector<1x128xf32> to vector<1x1x128xf32>
    tpu.vector_store %arg4[%c0_37, %c4_38, %c0_39], %65 {strides = array<i32>} : memref<1x8x128xf32, #tpu.memory_space<vmem>>, vector<1x1x128xf32>,
    return
  }
  func.func @transform_0(%arg0: i32, %arg1: i32) -> (i32, i32) {
    %c1_i32 = arith.constant 1 : i32
    %0 = arith.muli %arg0, %c1_i32 : i32
    %1 = arith.addi %0, %arg1 : i32
    %c0_i32 = arith.constant 0 : i32
    %c0_i32_0 = arith.constant 0 : i32
    return %1, %c0_i32 : i32, i32
  }
  func.func @transform_1(%arg0: i32, %arg1: i32) -> (i32, i32) {
    %c1_i32 = arith.constant 1 : i32
    %0 = arith.muli %arg0, %c1_i32 : i32
    %1 = arith.addi %0, %arg1 : i32
    %c0_i32 = arith.constant 0 : i32
    %c0_i32_0 = arith.constant 0 : i32
    return %1, %c0_i32 : i32, i32
  }
  func.func @transform_2(%arg0: i32, %arg1: i32) -> (i32, i32, i32) {
    %c0_i32 = arith.constant 0 : i32
    %c0_i32_0 = arith.constant 0 : i32
    %c0_i32_1 = arith.constant 0 : i32
    return %arg0, %c0_i32, %c0_i32_0 : i32, i32, i32
  }
}

</mosaic_0001>

<bundles_post_ra>
// kernel: tpu_custom_call.1
= control target key start
LH: loop header
LB: loop body
LE: loop exit
PB: predicated region body
PF: predicated region fallthrough
CT: control target
= control target key end

     0   :  { %7 = vsyncpa [#allocation3], 0  ;;  %s295_s0 = inlined_call_operand.hbm [shape: f32[16,128], index: 0, kind: input, shape index: {}]   ;;  %s296_s1 = inlined_call_operand.hbm [shape: f32[16,128], index: 1, kind: input, shape index: {}]   ;;  %s297_s2 = inlined_call_operand.hbm [shape: f32[1,8,128], index: 2, kind: output, shape index: {}]  }
   0x1   :  { %8 = vsyncpa [#allocation6], 0 }
   0x2   :  { %9 = vsyncpa [#allocation4], 0  ;;  %s18_s11 = sshll.u32 %s295_s0, 4  ;;  %s265_s12 = smov [#allocation2]   ;;  %s19_s11 = int_to_ptr.hbm [resolvable:$true] %s18_s11 }
   0x3   :  { %s20_s13 = sshll.u32 %s265_s12, 4  ;;  %s35_s16 = sshll.u32 %s296_s1, 4  ;;  %s21_s13 = int_to_ptr.vmem [resolvable:$true] %s20_s13  ;;  %s36_s16 = int_to_ptr.hbm [resolvable:$true] %s35_s16 }
   0x4   :  { %s266_s17 = smov 128   ;;  %s267_s18 = smov 8  }
   0x5   :  { %26 = dma.hbm_to_vmem [thread:$0]  %s19_s11, 256, %s21_s13, [#allocation3], %s266_s17, %s266_s17, %s267_s18  }
   0x6   :  { %s268_s19 = smov [#allocation5]  }
   0x7   :  { %s37_s20 = sshll.u32 %s268_s19, 4  ;;  %s38_s20 = int_to_ptr.vmem [resolvable:$true] %s37_s20 }
   0x8   :  { %43 = dma.hbm_to_vmem [thread:$0]  %s36_s16, 256, %s38_s20, [#allocation6], %s266_s17, %s266_s17, %s267_s18  }
   0x9   :  { %259 = dma.done.wait [#allocation3], 256  }
   0xa   :  { %260 = vsyncadd [#allocation3], 4294967040 }
   0xb   :  { %261 = dma.done.wait [#allocation6], 256  }
   0xc   :  { %262 = vsyncadd [#allocation6], 4294967040  ;;  %v269_v0 = vmov 0.0   ;;  %v61_v1 = vld [vmem:[#allocation2] sm:$0xff]  ;;  %v62_v2 = vld [vmem:[#allocation2 + $0x8] sm:$0xff]  ;;  %s270_s0 = smov [#allocation7]  }
   0xd   :  { %60 = vst [vmem:[#allocation7] sm:$0xff] %v269_v0  ;;  %v63_v3 = vld [vmem:[#allocation5] sm:$0xff]  ;;  %v64_v4 = vld [vmem:[#allocation5 + $0x8] sm:$0xff]  ;;  %175 = vlog2.f32 %v61_v1  ;;  %v71_v5 = vsub.f32 1.0, %v61_v1  ;;  %v72_v6 = vsub.f32 1.0, %v62_v2  ;;  %v132_v9 = vadd.f32 %v62_v2, %v61_v1  ;;  %s156_s1 = sshll.u32 %s270_s0, 4  ;;  %s157_s1 = int_to_ptr.vmem [resolvable:$true] %s156_s1 }
   0xe   :  { %177 = vlog2.f32 %v62_v2  ;;  %v120_v7 = vmul.f32 %v63_v3, %v61_v1  ;;  %v121_v8 = vmul.f32 %v64_v4, %v62_v2  ;;  %v142_v10 = vadd.f32 %v64_v4, %v63_v3  ;;  %s158_s23 = sshll.u32 %s297_s2, 4  ;;  %s159_s23 = int_to_ptr.hbm [resolvable:$true] %s158_s23 }
   0xf   :  { %179 = vlog2.f32 %v71_v5  ;;  %v133_v12 = vrot.slane %v132_v9, 4  ;;  %v81_v23 = vsub.f32 1.0, %v63_v3  ;;  %v82_v29 = vsub.f32 1.0, %v64_v4 }
  0x10   :  { %181 = vlog2.f32 %v72_v6  ;;  %v122_v11 = vadd.f32 %v121_v8, %v120_v7  ;;  %v143_v13 = vrot.slane %v142_v10, 4 }
  0x11   :  { %v134_v16 = vadd.f32 %v133_v12, %v132_v9 }
  0x12   :  { %v123_v14 = vrot.slane %v122_v11, 4  ;;  %v144_v17 = vadd.f32 %v143_v13, %v142_v10 }
  0x13   :  { %v176_v15 = vpop.eup %175  ;;  %v135_v24 = vrot.slane %v134_v16, 2 }
  0x14   :  { %v178_v18 = vpop.eup %177  ;;  %v66_v19 = vmul.f32 0.6931472, %v176_v15  ;;  %v124_v20 = vadd.f32 %v123_v14, %v122_v11  ;;  %v145_v25 = vrot.slane %v144_v17, 2  ;;  %v119_v45 = vld [vmem:[#allocation7 + $0x2] sm:$0x1] }
  0x15   :  { %v180_v21 = vpop.eup %179  ;;  %v68_v22 = vmul.f32 0.6931472, %v178_v18  ;;  %v136_v33 = vadd.f32 %v135_v24, %v134_v16  ;;  %v131_v46 = vld [vmem:[#allocation7 + $0x3] sm:$0x1]  ;;  %v141_v48 = vld [vmem:[#allocation7 + $0x4] sm:$0x1] }
  0x16   :  { %v182_v26 = vpop.eup %181  ;;  %v69_v27 = vmax.f32 %v66_v19, -100.0  ;;  %v74_v28 = vmul.f32 0.6931472, %v180_v21  ;;  %v125_v30 = vrot.slane %v124_v20, 2  ;;  %v146_v34 = vadd.f32 %v145_v25, %v144_v17  ;;  %v89_v9 = vld [vmem:[#allocation7] sm:$0x1] }
  0x17   :  { %v70_v31 = vmax.f32 %v68_v22, -100.0  ;;  %v76_v32 = vmul.f32 0.6931472, %v182_v26  ;;  %v137_v40 = vrot.slane %v136_v33, 1  ;;  %v109_v19 = vld [vmem:[#allocation7 + $0x1] sm:$0x1] }
  0x18   :  { %v77_v35 = vmax.f32 %v74_v28, -100.0  ;;  %v79_v36 = vmul.f32 %v69_v27, %v63_v3  ;;  %v126_v37 = vadd.f32 %v125_v30, %v124_v20  ;;  %v147_v41 = vrot.slane %v146_v34, 1 }
  0x19   :  { %v78_v38 = vmax.f32 %v76_v32, -100.0  ;;  %v80_v39 = vmul.f32 %v70_v31, %v64_v4  ;;  %v138_v47 = vadd.f32 %v137_v40, %v136_v33 }
  0x1a   :  { %v83_v42 = vmul.f32 %v81_v23, %v77_v35  ;;  %v127_v43 = vrot.slane %v126_v37, 1  ;;  %v148_v49 = vadd.f32 %v147_v41, %v146_v34 }
  0x1b   :  { %v84_v44 = vmul.f32 %v82_v29, %v78_v38  ;;  %v139_v53 = vadd.f32 %v138_v47, %v131_v46 }
  0x1c   :  { %v85_v50 = vadd.f32 %v83_v42, %v79_v36  ;;  %v128_v51 = vadd.f32 %v127_v43, %v126_v37  ;;  %v149_v54 = vadd.f32 %v148_v49, %v141_v48 }
  0x1d   :  { %v86_v52 = vadd.f32 %v84_v44, %v80_v39  ;;  %140 = vst [vmem:[#allocation7 + $0x3] sm:$0x1] %v139_v53 }
  0x1e   :  { %v99_v55 = vmul.f32 1.442695, %v85_v50  ;;  %v129_v56 = vadd.f32 %v128_v51, %v119_v45  ;;  %v87_v57 = vsub.f32 0.0, %v85_v50  ;;  %150 = vst [vmem:[#allocation7 + $0x4] sm:$0x1] %v149_v54 }
  0x1f   :  { %v88_v58 = vsub.f32 0.0, %v86_v52  ;;  %v101_v59 = vmul.f32 1.442695, %v86_v52 }
  0x20   :  { %183 = vpow2.f32 %v99_v55  ;;  %130 = vst [vmem:[#allocation7 + $0x2] sm:$0x1] %v129_v56 }
  0x21   :  { %v90_v60 = vadd.f32 %v88_v58, %v87_v57  ;;  %185 = vpow2.f32 %v101_v59 }
  0x23   :  { %v91_v61 = vrot.slane %v90_v60, 4 }
  0x25   :  { %v92_v62 = vadd.f32 %v91_v61, %v90_v60 }
  0x26   :  { %v184_v63 = vpop.eup %183 }
  0x27   :  { %v186_v0 = vpop.eup %185  ;;  %v93_v1 = vrot.slane %v92_v62, 2  ;;  %v103_v2 = vsub.f32 1.0, %v184_v63 }
  0x28   :  { %v104_v3 = vsub.f32 1.0, %v186_v0 }
  0x29   :  { %v94_v4 = vadd.f32 %v93_v1, %v92_v62  ;;  %v105_v5 = vmul.f32 %v103_v2, %v103_v2 }
  0x2a   :  { %v106_v6 = vmul.f32 %v104_v3, %v104_v3 }
  0x2b   :  { %v95_v7 = vrot.slane %v94_v4, 1  ;;  %v107_v8 = vmul.f32 %v105_v5, %v87_v57 }
  0x2c   :  { %v108_v10 = vmul.f32 %v106_v6, %v88_v58 }
  0x2d   :  { %v96_v11 = vadd.f32 %v95_v7, %v94_v4 }
  0x2e   :  { %v110_v12 = vadd.f32 %v108_v10, %v107_v8 }
  0x2f   :  { %v97_v13 = vadd.f32 %v96_v11, %v89_v9 }
  0x30   :  { %v111_v14 = vrot.slane %v110_v12, 4 }
  0x31   :  { %98 = vst [vmem:[#allocation7] sm:$0x1] %v97_v13 }
  0x32   :  { %v112_v15 = vadd.f32 %v111_v14, %v110_v12 }
  0x34   :  { %v113_v16 = vrot.slane %v112_v15, 2 }
  0x36   :  { %v114_v17 = vadd.f32 %v113_v16, %v112_v15 }
  0x38   :  { %v115_v18 = vrot.slane %v114_v17, 1 }
  0x3a   :  { %v116_v20 = vadd.f32 %v115_v18, %v114_v17 }
  0x3c   :  { %v117_v21 = vadd.f32 %v116_v20, %v109_v19 }
  0x3e   :  { %118 = vst [vmem:[#allocation7 + $0x1] sm:$0x1] %v117_v21 }
  0x3f   :  { %161 = dma.vmem_to_hbm [thread:$0]  %s157_s1, 128, %s159_s23, [#allocation4]  }
  0x40   :  { %263 = dma.done.wait [#allocation4], 128  }
  0x41   :  { %264 = vsyncadd [#allocation4], 4294967168 }
  0x42   :  { %166 = vsyncpa [#allocation3], 1 }
  0x43   :  { %167 = vsyncpa [#allocation6], 1 }
  0x44   :  { %168 = vsyncpa [#allocation4], 1 }

</bundles_post_ra>
